<compile_context>
chip_gen: v6e
topology: v6e:2x2x1
jax: 0.10.0
libtpu: 0.0.40
codegen_flags: <defaults>
</compile_context>

<pallas_src>
import jax
import jax.numpy as jnp
import numpy as np
from jax.experimental import pallas as pl
from jax.experimental.pallas import tpu as pltpu


# ----------------------------------------------------------------------------
# Kernels
# ----------------------------------------------------------------------------
def _resblock_rowband_kernel(x_ref, w1_ref, b1_ref, alpha_ref, w2_ref, b2_ref,
                             o_ref, xpad_ref):
    """Small-C path: channels stay fused with W on the lane axis throughout.

    x_ref    : (bt, H, W*C)      input rows; lane axis = (w, c) fused
    w*_ref   : (3, W*C, W*C)     per-vertical-tap banded weights (bf16/f32);
                                 the 3 horizontal taps + SAME padding along W
                                 are folded into the band structure
    b*_ref   : (1, W*C)          bias tiled across W (f32)
    alpha_ref: (1,)              PReLU shared slope (SMEM scalar)
    o_ref    : (bt, H, W*C)      x + net(x)   (lane-dense store)
    xpad_ref : (bt, H+2, W*C)    f32 scratch, 1-row zero halo top+bottom,
                                 reused by both convs
    """
    bt, H, WC = x_ref.shape

    def conv3x3(w_ref, b_ref):
        # One MXU matmul per vertical tap, K = N = W*C, f32 accumulation.
        y = b_ref[...].astype(jnp.float32)                         # (1, WC)
        for dy in range(3):
            wdy = w_ref[dy]                                         # (WC, WC)
            slab = xpad_ref[:, dy:dy + H, :].reshape(bt * H, WC)
            y = y + jnp.dot(slab.astype(wdy.dtype), wdy,
                            preferred_element_type=jnp.float32)
        return y                                                    # (bt*H, WC)

    x = x_ref[...].astype(jnp.float32)                              # (bt, H, WC)

    # Vertical halo: two full-lane-width row stores per step (cheap).  Not
    # gated on program_id==0 because the batch axis is "parallel": on megacore
    # parts each TensorCore has its own scratch and only one ever sees step 0.
    zrow = jnp.zeros((bt, 1, WC), jnp.float32)
    xpad_ref[:, 0:1, :] = zrow
    xpad_ref[:, H + 1:H + 2, :] = zrow

    # ---- conv1 + PReLU ----
    xpad_ref[:, 1:H + 1, :] = x
    y1 = conv3x3(w1_ref, b1_ref)
    a = alpha_ref[0]
    y1 = jnp.where(y1 >= 0.0, y1, a * y1)

    # ---- conv2: xpad is dead once conv1's slabs are consumed -> reuse it ----
    xpad_ref[:, 1:H + 1, :] = y1.reshape(bt, H, WC)
    y2 = conv3x3(w2_ref, b2_ref)

    # ---- residual add + lane-dense store ----
    o_ref[...] = (x + y2.reshape(bt, H, WC)).astype(o_ref.dtype)


def _resblock_im2col_kernel(x_ref, w1_ref, b1_ref, alpha_ref, w2_ref, b2_ref,
                            o_ref, xpad_ref):
    """General path (C >= ~32; stores are naturally lane-dense once C >= 128).

    x_ref    : (bt, H, W, C)
    w*_ref   : (9*C, C)          im2col layout ((dy, dx, ci) x co), bf16/f32
    b*_ref   : (1, C)
    alpha_ref: (1,)              SMEM scalar
    o_ref    : (bt, H, W, C)
    xpad_ref : (bt, H+2, W+2, C) f32 scratch, shared by both convs
    """
    bt, H, W, C = x_ref.shape

    def conv3x3(w_ref, b_ref):
        # Per-dy K=3C matmuls: the im2col slab is 3x (not 9x) the tile and the
        # MXU sees a healthier K; bf16 operands, f32 accumulation.
        y = b_ref[...].astype(jnp.float32)                          # (1, C)
        for dy in range(3):
            slab = jnp.concatenate(
                [xpad_ref[:, dy:dy + H, dx:dx + W, :] for dx in range(3)],
                axis=-1).reshape(bt * H * W, 3 * C)
            wdy = w_ref[dy * 3 * C:(dy + 1) * 3 * C, :]
            y = y + jnp.dot(slab.astype(wdy.dtype), wdy,
                            preferred_element_type=jnp.float32)
        return y                                                    # (bt*H*W, C)

    x = x_ref[...].astype(jnp.float32)

    # Zero only the 1-pixel halo ring (2 rows + 2 columns); the interior is
    # overwritten below.  Per-step for the same megacore reason as above.
    z_row = jnp.zeros((bt, 1, W + 2, C), jnp.float32)
    z_col = jnp.zeros((bt, H + 2, 1, C), jnp.float32)
    xpad_ref[:, 0:1, :, :] = z_row
    xpad_ref[:, H + 1:H + 2, :, :] = z_row
    xpad_ref[:, :, 0:1, :] = z_col
    xpad_ref[:, :, W + 1:W + 2, :] = z_col

    # ---- conv1 + PReLU ----
    xpad_ref[:, 1:H + 1, 1:W + 1, :] = x
    y1 = conv3x3(w1_ref, b1_ref)
    a = alpha_ref[0]
    y1 = jnp.where(y1 >= 0.0, y1, a * y1)

    # ---- conv2 reuses the same padded scratch ----
    xpad_ref[:, 1:H + 1, 1:W + 1, :] = y1.reshape(bt, H, W, C)
    y2 = conv3x3(w2_ref, b2_ref)

    # ---- residual add ----
    o_ref[...] = (x + y2.reshape(bt, H, W, C)).astype(o_ref.dtype)


# ----------------------------------------------------------------------------
# Wrapper
# ----------------------------------------------------------------------------
def _banded_weights(w_hwio, W):
    """(3, 3, Cin, Cout) conv weights -> (3, W*Cin, W*Cout) banded matrices.

    Block dy realizes all three horizontal taps with "SAME" zero padding
    folded in:  wb[dy] = sum_dx kron(shifted_identity(k=1-dx), w[dy, dx]).
    """
    kh, kw = int(w_hwio.shape[0]), int(w_hwio.shape[1])
    blocks = []
    for dy in range(kh):
        acc = None
        for dx in range(kw):
            band = jnp.kron(jnp.eye(W, W, 1 - dx, dtype=w_hwio.dtype),
                            w_hwio[dy, dx])
            acc = band if acc is None else acc + band
        blocks.append(acc)
    return jnp.stack(blocks)                            # (3, W*Cin, W*Cout)


def _vmem_plan(path, B, H, W, C, itemsize, batch_tile):
    """Per-generation batch tile + scoped-VMEM limit."""
    try:
        vmem_phys = int(pltpu.get_tpu_info().vmem_capacity_bytes)
    except Exception:
        vmem_phys = 64 * 2**20                          # conservative (v7x-sized)
    # Bigger per-step tiles amortize the ~0.35us/step pipeline overhead
    # (v5e/v6e have 128 MiB VMEM); keep real headroom on v7x (64 MiB total).
    ws_target = min(vmem_phys // 4, 48 * 2**20)
    wc = W * C
    if path == "rowband":
        per_img = ((H + 2) * wc + 8 * H * wc) * 4 + 4 * H * wc * itemsize
        weight_bytes = 2 * 2 * (3 * wc * wc * 2 + wc * 4)
    else:
        per_img = (((H + 2) * (W + 2) * C + 10 * H * W * C) * 4
                   + 4 * H * W * C * itemsize)
        weight_bytes = 2 * 2 * (9 * C * C * 2 + C * 4)
    if batch_tile is None:
        batch_tile = max(1, min(B, ws_target // max(per_img, 1)))
        if B >= 2:
            # >=2 grid steps: both v7x TensorCores get work and the BlockSpec
            # pipeline has a next/previous block to overlap with.
            batch_tile = min(batch_tile, B // 2)
    # NOTE: prime/awkward B degrades to batch_tile=1 (correct, just smaller
    # steps); a masked-tail grid would remove the cliff.
    while B % batch_tile:
        batch_tile -= 1
    est = batch_tile * per_img + weight_bytes
    ceiling = min(vmem_phys * 3 // 4, 100 * 2**20)      # never the whole VMEM
    vmem_limit = int(min(max(2 * est, 32 * 2**20), ceiling))
    return batch_tile, vmem_limit


def residual_block(x_nchw, params, *, batch_tile=None, path=None,
                   matmul_dtype=jnp.bfloat16):
    """x_nchw: (B, C, H, W) -> (B, C, H, W) computing x + conv(prelu(conv(x))).

    params = (w1, b1, alpha, w2, b2) with w*: (3, 3, Cin, Cout) HWIO layout
    (torch Conv2d weight (Cout, Cin, 3, 3) -> permute(2, 3, 1, 0)), b*: (Cout,),
    alpha: (1,) shared PReLU slope.  Requires in_channels == out_channels.
    """
    w1, b1, alpha, w2, b2 = params
    B, C, H, W = x_nchw.shape
    if w1.shape != (3, 3, C, C) or w2.shape != (3, 3, C, C):
        raise ValueError("kernel supports k=3, p=1 and in_channels == "
                         "out_channels (required for the residual add)")

    x = jnp.transpose(x_nchw, (0, 2, 3, 1))             # NCHW -> NHWC (glue only)
    if path is None:
        # Small C: keep channels fused with W on the lane axis (lane-dense
        # stores, no im2col concat).  Larger C: classic im2col matmul, which
        # is itself lane-dense once C >= 128.
        path = "rowband" if (C <= 16 and W * C <= 1024) else "im2col"

    bt, vmem_limit = _vmem_plan(path, B, H, W, C, x.dtype.itemsize, batch_tile)
    grid = (B // bt,)
    alpha = jnp.asarray(alpha, jnp.float32).reshape(1)

    if path == "rowband":
        WC = W * C
        wk1 = _banded_weights(jnp.asarray(w1, jnp.float32), W).astype(matmul_dtype)
        wk2 = _banded_weights(jnp.asarray(w2, jnp.float32), W).astype(matmul_dtype)
        bk1 = jnp.tile(jnp.asarray(b1, jnp.float32), W).reshape(1, WC)
        bk2 = jnp.tile(jnp.asarray(b2, jnp.float32), W).reshape(1, WC)
        x_in = x.reshape(B, H, WC)                      # lane-dense presentation
        kernel = _resblock_rowband_kernel
        in_specs = [
            pl.BlockSpec((bt, H, WC), lambda b: (b, 0, 0)),          # x
            pl.BlockSpec((3, WC, WC), lambda b: (0, 0, 0)),          # w1 (banded)
            pl.BlockSpec((1, WC), lambda b: (0, 0)),                 # b1
            pl.BlockSpec((1,), lambda b: (0,),
                         memory_space=pltpu.MemorySpace.SMEM),       # alpha
            pl.BlockSpec((3, WC, WC), lambda b: (0, 0, 0)),          # w2
            pl.BlockSpec((1, WC), lambda b: (0, 0)),                 # b2
        ]
        out_specs = pl.BlockSpec((bt, H, WC), lambda b: (b, 0, 0))
        out_shape = jax.ShapeDtypeStruct((B, H, WC), x.dtype)
        scratch_shapes = [pltpu.VMEM((bt, H + 2, WC), jnp.float32)]
    else:
        wk1 = jnp.asarray(w1, jnp.float32).reshape(9 * C, C).astype(matmul_dtype)
        wk2 = jnp.asarray(w2, jnp.float32).reshape(9 * C, C).astype(matmul_dtype)
        bk1 = jnp.asarray(b1, jnp.float32).reshape(1, C)
        bk2 = jnp.asarray(b2, jnp.float32).reshape(1, C)
        x_in = x
        kernel = _resblock_im2col_kernel
        in_specs = [
            pl.BlockSpec((bt, H, W, C), lambda b: (b, 0, 0, 0)),     # x
            pl.BlockSpec((9 * C, C), lambda b: (0, 0)),              # w1 (im2col)
            pl.BlockSpec((1, C), lambda b: (0, 0)),                  # b1
            pl.BlockSpec((1,), lambda b: (0,),
                         memory_space=pltpu.MemorySpace.SMEM),       # alpha
            pl.BlockSpec((9 * C, C), lambda b: (0, 0)),              # w2
            pl.BlockSpec((1, C), lambda b: (0, 0)),                  # b2
        ]
        out_specs = pl.BlockSpec((bt, H, W, C), lambda b: (b, 0, 0, 0))
        out_shape = jax.ShapeDtypeStruct((B, H, W, C), x.dtype)
        scratch_shapes = [pltpu.VMEM((bt, H + 2, W + 2, C), jnp.float32)]

    out = pl.pallas_call(
        kernel,
        out_shape=out_shape,
        grid_spec=pltpu.PrefetchScalarGridSpec(
            num_scalar_prefetch=0,
            grid=grid,
            in_specs=in_specs,
            out_specs=out_specs,
            scratch_shapes=scratch_shapes),
        compiler_params=pltpu.CompilerParams(
            dimension_semantics=("parallel",),
            vmem_limit_bytes=vmem_limit),
    )(x_in, wk1, bk1, alpha, wk2, bk2)

    if path == "rowband":
        out = out.reshape(B, H, W, C)
    return jnp.transpose(out, (0, 3, 1, 2))             # NHWC -> NCHW (glue only)


# ----------------------------------------------------------------------------
# Parameters / reference
# ----------------------------------------------------------------------------
def make_params(key, c):
    """Deterministic synthetic parameters (torch-style uniform init).

    Weights are HWIO (3, 3, Cin, Cout); torch (Cout, Cin, 3, 3) converts via
    w.permute(2, 3, 1, 0).
    """
    k1, k2, k3, k4 = jax.random.split(key, 4)
    bound = 1.0 / np.sqrt(9 * c)
    w1 = jax.random.uniform(k1, (3, 3, c, c), jnp.float32, -bound, bound)
    b1 = jax.random.uniform(k2, (c,), jnp.float32, -bound, bound)
    alpha = jnp.full((1,), 0.25, jnp.float32)            # nn.PReLU() default
    w2 = jax.random.uniform(k3, (3, 3, c, c), jnp.float32, -bound, bound)
    b2 = jax.random.uniform(k4, (c,), jnp.float32, -bound, bound)
    return (w1, b1, alpha, w2, b2)


def reference(x_nchw, params):
    """Pure-JAX reference (conv_general_dilated) matching the torch module."""
    w1, b1, alpha, w2, b2 = params
    x = jnp.transpose(x_nchw, (0, 2, 3, 1))
    dn = jax.lax.conv_dimension_numbers(x.shape, w1.shape,
                                        ('NHWC', 'HWIO', 'NHWC'))
    y = jax.lax.conv_general_dilated(x, w1, (1, 1), 'SAME',
                                     dimension_numbers=dn) + b1
    y = jnp.where(y >= 0, y, alpha[0] * y)
    y = jax.lax.conv_general_dilated(y, w2, (1, 1), 'SAME',
                                     dimension_numbers=dn) + b2
    return jnp.transpose(x + y, (0, 3, 1, 2))


# ----------------------------------------------------------------------------
# Self-test
# ----------------------------------------------------------------------------
if __name__ == "__main__":
    key = jax.random.PRNGKey(0)
    kx, kp = jax.random.split(key)

    B, C, H, W = 2, 4, 16, 16                            # in_channels == out_channels
    x = jax.random.normal(kx, (B, C, H, W), jnp.float32)
    params = make_params(kp, C)

    ref = jax.block_until_ready(reference(x, params))

    checks = [
        ("rowband", jnp.bfloat16, 5e-2),                 # primary small-C path
        ("rowband", jnp.float32, 2e-2),
        ("im2col", jnp.bfloat16, 5e-2),                  # general path, forced
        ("im2col", jnp.float32, 2e-2),
    ]
    for path, mm_dtype, tol in checks:
        out = jax.block_until_ready(
            residual_block(x, params, path=path, matmul_dtype=mm_dtype))
        np.testing.assert_allclose(np.asarray(out), np.asarray(ref),
                                   rtol=tol, atol=tol)

    print("KERNEL_OK")
</pallas_src>

<mosaic_0001>
module attributes {stable_mosaic.version = 11 : i64} {
  func.func @_resblock_rowband_kernel(%arg0: i32, %arg1: memref<1x16x64xf32, #tpu.memory_space<vmem>>, %arg2: memref<3x64x64xbf16, #tpu.memory_space<vmem>>, %arg3: memref<1x64xf32, #tpu.memory_space<vmem>>, %arg4: memref<1xf32, #tpu.memory_space<smem>>, %arg5: memref<3x64x64xbf16, #tpu.memory_space<vmem>>, %arg6: memref<1x64xf32, #tpu.memory_space<vmem>>, %arg7: memref<1x16x64xf32, #tpu.memory_space<vmem>>, %arg8: memref<1x18x64xf32, #tpu.memory_space<vmem>>) attributes {dimension_semantics = [#tpu.dimension_semantics<parallel>], iteration_bounds = array<i64: 2>, scalar_prefetch = 0 : i64, scratch_operands = 1 : i64, tpu.core_type = #tpu.core_type<tc>, window_params = [{transform_indices = @transform_0, window_bounds = array<i64: 1, 16, 64>}, {pipeline_mode = #tpu.pipeline_mode<synchronous>, transform_indices = @transform_1, window_bounds = array<i64: 3, 64, 64>}, {pipeline_mode = #tpu.pipeline_mode<synchronous>, transform_indices = @transform_2, window_bounds = array<i64: 1, 64>}, {transform_indices = @transform_3, window_bounds = array<i64: 1>}, {pipeline_mode = #tpu.pipeline_mode<synchronous>, transform_indices = @transform_4, window_bounds = array<i64: 3, 64, 64>}, {pipeline_mode = #tpu.pipeline_mode<synchronous>, transform_indices = @transform_5, window_bounds = array<i64: 1, 64>}, {transform_indices = @transform_6, window_bounds = array<i64: 1, 16, 64>}]} {
    %c0 = arith.constant 0 : index
    %c0_0 = arith.constant 0 : index
    %c0_1 = arith.constant 0 : index
    %0 = vector.load %arg1[%c0, %c0_0, %c0_1] : memref<1x16x64xf32, #tpu.memory_space<vmem>>, vector<1x16x64xf32>
    %cst = arith.constant 0.000000e+00 : f32
    %1 = vector.broadcast %cst : f32 to vector<1x1x64xf32>
    %c0_2 = arith.constant 0 : index
    %c0_3 = arith.constant 0 : index
    %c0_4 = arith.constant 0 : index
    %2 = vector.load %arg8[%c0_2, %c0_3, %c0_4] : memref<1x18x64xf32, #tpu.memory_space<vmem>>, vector<1x1x64xf32>
    tpu.vector_store %arg8[%c0_2, %c0_3, %c0_4], %1 {strides = array<i32>} : memref<1x18x64xf32, #tpu.memory_space<vmem>>, vector<1x1x64xf32>,
    %c0_5 = arith.constant 0 : index
    %c17 = arith.constant 17 : index
    %c0_6 = arith.constant 0 : index
    %3 = vector.load %arg8[%c0_5, %c17, %c0_6] : memref<1x18x64xf32, #tpu.memory_space<vmem>>, vector<1x1x64xf32>
    tpu.vector_store %arg8[%c0_5, %c17, %c0_6], %1 {strides = array<i32>} : memref<1x18x64xf32, #tpu.memory_space<vmem>>, vector<1x1x64xf32>,
    %c0_7 = arith.constant 0 : index
    %c1 = arith.constant 1 : index
    %c0_8 = arith.constant 0 : index
    %4 = vector.load %arg8[%c0_7, %c1, %c0_8] : memref<1x18x64xf32, #tpu.memory_space<vmem>>, vector<1x16x64xf32>
    tpu.vector_store %arg8[%c0_7, %c1, %c0_8], %0 {strides = array<i32>} : memref<1x18x64xf32, #tpu.memory_space<vmem>>, vector<1x16x64xf32>,
    %c0_9 = arith.constant 0 : index
    %c0_10 = arith.constant 0 : index
    %5 = vector.load %arg3[%c0_9, %c0_10] : memref<1x64xf32, #tpu.memory_space<vmem>>, vector<1x64xf32>
    %c0_11 = arith.constant 0 : index
    %c0_12 = arith.constant 0 : index
    %c0_13 = arith.constant 0 : index
    %6 = vector.load %arg2[%c0_11, %c0_12, %c0_13] : memref<3x64x64xbf16, #tpu.memory_space<vmem>>, vector<1x64x64xbf16>
    %7 = vector.shape_cast %6 : vector<1x64x64xbf16> to vector<64x64xbf16>
    %c0_14 = arith.constant 0 : index
    %c0_15 = arith.constant 0 : index
    %c0_16 = arith.constant 0 : index
    %8 = vector.load %arg8[%c0_14, %c0_15, %c0_16] : memref<1x18x64xf32, #tpu.memory_space<vmem>>, vector<1x16x64xf32>
    %9 = vector.shape_cast %8 : vector<1x16x64xf32> to vector<16x64xf32>
    %10 = arith.truncf %9 : vector<16x64xf32> to vector<16x64xbf16>
    %cst_17 = arith.constant dense<0.000000e+00> : vector<16x64xf32>
    %11 = tpu.matmul %10, %7, %cst_17 {dimension_numbers = #tpu.dot_dimension_numbers<[1], [0], [0], [1], [0, 0, 1, 1], [], []>} : vector<16x64xbf16>, vector<64x64xbf16>, vector<16x64xf32> -> vector<16x64xf32>
    %12 = vector.broadcast %5 : vector<1x64xf32> to vector<16x64xf32>
    %13 = arith.addf %12, %11 : vector<16x64xf32>
    %c1_18 = arith.constant 1 : index
    %c0_19 = arith.constant 0 : index
    %c0_20 = arith.constant 0 : index
    %14 = vector.load %arg2[%c1_18, %c0_19, %c0_20] : memref<3x64x64xbf16, #tpu.memory_space<vmem>>, vector<1x64x64xbf16>
    %15 = vector.shape_cast %14 : vector<1x64x64xbf16> to vector<64x64xbf16>
    %c0_21 = arith.constant 0 : index
    %c1_22 = arith.constant 1 : index
    %c0_23 = arith.constant 0 : index
    %16 = vector.load %arg8[%c0_21, %c1_22, %c0_23] : memref<1x18x64xf32, #tpu.memory_space<vmem>>, vector<1x16x64xf32>
    %17 = vector.shape_cast %16 : vector<1x16x64xf32> to vector<16x64xf32>
    %18 = arith.truncf %17 : vector<16x64xf32> to vector<16x64xbf16>
    %cst_24 = arith.constant dense<0.000000e+00> : vector<16x64xf32>
    %19 = tpu.matmul %18, %15, %cst_24 {dimension_numbers = #tpu.dot_dimension_numbers<[1], [0], [0], [1], [0, 0, 1, 1], [], []>} : vector<16x64xbf16>, vector<64x64xbf16>, vector<16x64xf32> -> vector<16x64xf32>
    %20 = arith.addf %13, %19 : vector<16x64xf32>
    %c2 = arith.constant 2 : index
    %c0_25 = arith.constant 0 : index
    %c0_26 = arith.constant 0 : index
    %21 = vector.load %arg2[%c2, %c0_25, %c0_26] : memref<3x64x64xbf16, #tpu.memory_space<vmem>>, vector<1x64x64xbf16>
    %22 = vector.shape_cast %21 : vector<1x64x64xbf16> to vector<64x64xbf16>
    %c0_27 = arith.constant 0 : index
    %c2_28 = arith.constant 2 : index
    %c0_29 = arith.constant 0 : index
    %23 = vector.load %arg8[%c0_27, %c2_28, %c0_29] : memref<1x18x64xf32, #tpu.memory_space<vmem>>, vector<1x16x64xf32>
    %24 = vector.shape_cast %23 : vector<1x16x64xf32> to vector<16x64xf32>
    %25 = arith.truncf %24 : vector<16x64xf32> to vector<16x64xbf16>
    %cst_30 = arith.constant dense<0.000000e+00> : vector<16x64xf32>
    %26 = tpu.matmul %25, %22, %cst_30 {dimension_numbers = #tpu.dot_dimension_numbers<[1], [0], [0], [1], [0, 0, 1, 1], [], []>} : vector<16x64xbf16>, vector<64x64xbf16>, vector<16x64xf32> -> vector<16x64xf32>
    %27 = arith.addf %20, %26 : vector<16x64xf32>
    %c0_31 = arith.constant 0 : index
    %28 = memref.load %arg4[%c0_31] : memref<1xf32, #tpu.memory_space<smem>>
    %cst_32 = arith.constant 0.000000e+00 : f32
    %29 = vector.broadcast %cst_32 : f32 to vector<16x64xf32>
    %30 = arith.cmpf oge, %27, %29 : vector<16x64xf32>
    %31 = vector.broadcast %28 : f32 to vector<16x64xf32>
    %32 = arith.mulf %31, %27 : vector<16x64xf32>
    %33 = arith.select %30, %27, %32 : vector<16x64xi1>, vector<16x64xf32>
    %34 = vector.shape_cast %33 : vector<16x64xf32> to vector<1x16x64xf32>
    %c0_33 = arith.constant 0 : index
    %c1_34 = arith.constant 1 : index
    %c0_35 = arith.constant 0 : index
    %35 = vector.load %arg8[%c0_33, %c1_34, %c0_35] : memref<1x18x64xf32, #tpu.memory_space<vmem>>, vector<1x16x64xf32>
    tpu.vector_store %arg8[%c0_33, %c1_34, %c0_35], %34 {strides = array<i32>} : memref<1x18x64xf32, #tpu.memory_space<vmem>>, vector<1x16x64xf32>,
    %c0_36 = arith.constant 0 : index
    %c0_37 = arith.constant 0 : index
    %36 = vector.load %arg6[%c0_36, %c0_37] : memref<1x64xf32, #tpu.memory_space<vmem>>, vector<1x64xf32>
    %c0_38 = arith.constant 0 : index
    %c0_39 = arith.constant 0 : index
    %c0_40 = arith.constant 0 : index
    %37 = vector.load %arg5[%c0_38, %c0_39, %c0_40] : memref<3x64x64xbf16, #tpu.memory_space<vmem>>, vector<1x64x64xbf16>
    %38 = vector.shape_cast %37 : vector<1x64x64xbf16> to vector<64x64xbf16>
    %c0_41 = arith.constant 0 : index
    %c0_42 = arith.constant 0 : index
    %c0_43 = arith.constant 0 : index
    %39 = vector.load %arg8[%c0_41, %c0_42, %c0_43] : memref<1x18x64xf32, #tpu.memory_space<vmem>>, vector<1x16x64xf32>
    %40 = vector.shape_cast %39 : vector<1x16x64xf32> to vector<16x64xf32>
    %41 = arith.truncf %40 : vector<16x64xf32> to vector<16x64xbf16>
    %cst_44 = arith.constant dense<0.000000e+00> : vector<16x64xf32>
    %42 = tpu.matmul %41, %38, %cst_44 {dimension_numbers = #tpu.dot_dimension_numbers<[1], [0], [0], [1], [0, 0, 1, 1], [], []>} : vector<16x64xbf16>, vector<64x64xbf16>, vector<16x64xf32> -> vector<16x64xf32>
    %43 = vector.broadcast %36 : vector<1x64xf32> to vector<16x64xf32>
    %44 = arith.addf %43, %42 : vector<16x64xf32>
    %c1_45 = arith.constant 1 : index
    %c0_46 = arith.constant 0 : index
    %c0_47 = arith.constant 0 : index
    %45 = vector.load %arg5[%c1_45, %c0_46, %c0_47] : memref<3x64x64xbf16, #tpu.memory_space<vmem>>, vector<1x64x64xbf16>
    %46 = vector.shape_cast %45 : vector<1x64x64xbf16> to vector<64x64xbf16>
    %c0_48 = arith.constant 0 : index
    %c1_49 = arith.constant 1 : index
    %c0_50 = arith.constant 0 : index
    %47 = vector.load %arg8[%c0_48, %c1_49, %c0_50] : memref<1x18x64xf32, #tpu.memory_space<vmem>>, vector<1x16x64xf32>
    %48 = vector.shape_cast %47 : vector<1x16x64xf32> to vector<16x64xf32>
    %49 = arith.truncf %48 : vector<16x64xf32> to vector<16x64xbf16>
    %cst_51 = arith.constant dense<0.000000e+00> : vector<16x64xf32>
    %50 = tpu.matmul %49, %46, %cst_51 {dimension_numbers = #tpu.dot_dimension_numbers<[1], [0], [0], [1], [0, 0, 1, 1], [], []>} : vector<16x64xbf16>, vector<64x64xbf16>, vector<16x64xf32> -> vector<16x64xf32>
    %51 = arith.addf %44, %50 : vector<16x64xf32>
    %c2_52 = arith.constant 2 : index
    %c0_53 = arith.constant 0 : index
    %c0_54 = arith.constant 0 : index
    %52 = vector.load %arg5[%c2_52, %c0_53, %c0_54] : memref<3x64x64xbf16, #tpu.memory_space<vmem>>, vector<1x64x64xbf16>
    %53 = vector.shape_cast %52 : vector<1x64x64xbf16> to vector<64x64xbf16>
    %c0_55 = arith.constant 0 : index
    %c2_56 = arith.constant 2 : index
    %c0_57 = arith.constant 0 : index
    %54 = vector.load %arg8[%c0_55, %c2_56, %c0_57] : memref<1x18x64xf32, #tpu.memory_space<vmem>>, vector<1x16x64xf32>
    %55 = vector.shape_cast %54 : vector<1x16x64xf32> to vector<16x64xf32>
    %56 = arith.truncf %55 : vector<16x64xf32> to vector<16x64xbf16>
    %cst_58 = arith.constant dense<0.000000e+00> : vector<16x64xf32>
    %57 = tpu.matmul %56, %53, %cst_58 {dimension_numbers = #tpu.dot_dimension_numbers<[1], [0], [0], [1], [0, 0, 1, 1], [], []>} : vector<16x64xbf16>, vector<64x64xbf16>, vector<16x64xf32> -> vector<16x64xf32>
    %58 = arith.addf %51, %57 : vector<16x64xf32>
    %59 = vector.shape_cast %58 : vector<16x64xf32> to vector<1x16x64xf32>
    %60 = arith.addf %0, %59 : vector<1x16x64xf32>
    %c0_59 = arith.constant 0 : index
    %c0_60 = arith.constant 0 : index
    %c0_61 = arith.constant 0 : index
    %61 = vector.load %arg7[%c0_59, %c0_60, %c0_61] : memref<1x16x64xf32, #tpu.memory_space<vmem>>, vector<1x16x64xf32>
    tpu.vector_store %arg7[%c0_59, %c0_60, %c0_61], %60 {strides = array<i32>} : memref<1x16x64xf32, #tpu.memory_space<vmem>>, vector<1x16x64xf32>,
    return
  }
  func.func @transform_0(%arg0: i32) -> (i32, i32, i32) {
    %c0_i32 = arith.constant 0 : i32
    %c0_i32_0 = arith.constant 0 : i32
    %c0_i32_1 = arith.constant 0 : i32
    return %arg0, %c0_i32, %c0_i32_0 : i32, i32, i32
  }
  func.func @transform_1(%arg0: i32) -> (i32, i32, i32) {
    %c0_i32 = arith.constant 0 : i32
    %c0_i32_0 = arith.constant 0 : i32
    %c0_i32_1 = arith.constant 0 : i32
    %c0_i32_2 = arith.constant 0 : i32
    return %c0_i32, %c0_i32_0, %c0_i32_1 : i32, i32, i32
  }
  func.func @transform_2(%arg0: i32) -> (i32, i32) {
    %c0_i32 = arith.constant 0 : i32
    %c0_i32_0 = arith.constant 0 : i32
    %c0_i32_1 = arith.constant 0 : i32
    return %c0_i32, %c0_i32_0 : i32, i32
  }
  func.func @transform_3(%arg0: i32) -> i32 {
    %c0_i32 = arith.constant 0 : i32
    %c0_i32_0 = arith.constant 0 : i32
    return %c0_i32 : i32
  }
  func.func @transform_4(%arg0: i32) -> (i32, i32, i32) {
    %c0_i32 = arith.constant 0 : i32
    %c0_i32_0 = arith.constant 0 : i32
    %c0_i32_1 = arith.constant 0 : i32
    %c0_i32_2 = arith.constant 0 : i32
    return %c0_i32, %c0_i32_0, %c0_i32_1 : i32, i32, i32
  }
  func.func @transform_5(%arg0: i32) -> (i32, i32) {
    %c0_i32 = arith.constant 0 : i32
    %c0_i32_0 = arith.constant 0 : i32
    %c0_i32_1 = arith.constant 0 : i32
    return %c0_i32, %c0_i32_0 : i32, i32
  }
  func.func @transform_6(%arg0: i32) -> (i32, i32, i32) {
    %c0_i32 = arith.constant 0 : i32
    %c0_i32_0 = arith.constant 0 : i32
    %c0_i32_1 = arith.constant 0 : i32
    return %arg0, %c0_i32, %c0_i32_0 : i32, i32, i32
  }
}

</mosaic_0001>

<bundles_post_ra>
// kernel: tpu_custom_call.1
= control target key start
LH: loop header
LB: loop body
LE: loop exit
PB: predicated region body
PF: predicated region fallthrough
CT: control target
= control target key end

     0   :  { %s1642_s0 = inlined_call_operand.hbm [shape: f32[2,16,64], index: 0, kind: input, shape index: {}]   ;;  %s1643_s1 = inlined_call_operand.hbm [shape: bf16[3,64,64], index: 1, kind: input, shape index: {}]   ;;  %s1644_s2 = inlined_call_operand.vmem [shape: f32[1,64], index: 2, kind: input, shape index: {}]   ;;  %s1645_s3 = inlined_call_operand.<no memory space> [shape: f32[1], index: 3, kind: input, shape index: {}]   ;;  %s1646_s4 = inlined_call_operand.hbm [shape: bf16[3,64,64], index: 4, kind: input, shape index: {}]   ;;  %s1647_s5 = inlined_call_operand.vmem [shape: f32[1,64], index: 5, kind: input, shape index: {}]   ;;  %s1648_s6 = inlined_call_operand.hbm [shape: f32[2,16,64], index: 6, kind: output, shape index: {}]  }
   0x1   :  { %11 = sst [smem:[#allocation3]] %s1645_s3 }
   0x2   :  { %12 = vsyncpa [#allocation5], 0 }
   0x3   :  { %14 = vsyncpa [#allocation5 + $0x1], 0 }
   0x4   :  { %15 = vsyncpa [#allocation8], 0 }
   0x5   :  { %16 = vsyncpa [#allocation6], 0 }
   0x6   :  { %18 = vsyncpa [#allocation6 + $0x1], 0  ;;  %s1386_s23 = smov 0   ;;  %s1388_s24 = smov 0  }
   0x7   :  { %s1390_s25 = smov 0   ;;  %s1392_s26 = smov 0  }
   0x8 LB: > { %s1407_s3 = sadd.s32 4294967295, %s1334_s26   ;;  %s933_s27 = sadd.s32 4294967294, %s1334_s26   ;;  %s1334_s26 = sphi %s1392_s26, %s1670_s26   ;;  %s1330_s25 = sphi %s1390_s25, %s1669_s25   ;;  %s1326_s24 = sphi %s1388_s24, %s1668_s24   ;;  %s1322_s23 = sphi %s1386_s23, %s1667_s23  }
   0x9   : > { %p44_p0 = scmp.ne.s32.totalorder %s1326_s24, %s1322_s23  ;;  %p1649_p1 = scmp.eq.s32.totalorder %s1407_s3, 0 }
   0xa   : > { %p179_p3 = scmp.eq.s32.totalorder %s933_s27, 1  ;;  %p934_p5 = scmp.ge.s32.totalorder %s1334_s26, 1 }
   0xb   : > { %p1416_p4 = por %p1649_p1, %p44_p0  ;;  %p186_p7 = scmp.lt.s32.totalorder %s1334_s26, 3 }
   0xc   : > { %p1421_p6 = por %p179_p3, %p44_p0  ;;  %s1336_s7 = smov [#allocation7]  }
   0xd   : > { %s1653_s28 = scalar_select %p1416_p4, 1, 0 }
   0xe   : > { %s1654_s29 = scalar_select %p1421_p6, 1, 0 }
   0xf   : > { %p1426_p8 = pnand %p934_p5, %p186_p7  ;;  %s198_s8 = sshll.u32 %s1336_s7, 4  ;;  %s199_s8 = int_to_ptr.vmem [resolvable:$true] %s198_s8 }
  0x10   : > { %s1337_s10 = smov [#allocation9]   ;;  %s1197_s12 = scalar_lea.vmem %s199_s8, 1536 }
  0x11   : > { %s1655_s30 = scalar_select %p1426_p8, 1, 0 }
  0x12   : > { %p1099_p9 = pneg %p1426_p8  ;;  %s217_s11 = sshll.u32 %s1337_s10, 4  ;;  %s218_s11 = int_to_ptr.vmem [resolvable:$true] %s217_s11 }
  0x13   : > { %p1198_p13 = scmp.ne.s32.totalorder %s199_s8, %s1197_s12  ;;  %p1205_p5 = scmp.lt.s32.totalorder %s199_s8, %s199_s8 }
  0x14   : > { %p1435_p11 = pnand %p1099_p9, %p1649_p1  ;;  %p1206_p7 = scmp.lt.s32.totalorder %s1197_s12, %s1197_s12 }
  0x16   : > { %p1188_p12 = pneg %p1435_p11  ;;  %p1207_p10 = por %p1206_p7, %p1205_p5 }
  0x18   : > { %p1200_p0 = pnand %p1198_p13, %p1188_p12 }
  0x1a   : > { %p1201_p3 = pneg %p1200_p0 }
  0x1c   : > { %p1208_p9 = pnand %p1207_p10, %p1201_p3 }
  0x1e   : > { %1211 = shalt.err (!%p1208_p9)
}
  0x1f   : > { %s1338_s13 = smov 64   ;;  %s1339_s14 = smov 4  }
  0x20   : > { %1102 = dma.hbm_to_vmem [thread:$0]  (!%p1435_p11), %s1643_s1, 1536, %s199_s8, [#allocation8], %s1338_s13, %s1338_s13, %s1339_s14  }
  0x21   : > { %s1223_s17 = scalar_lea.vmem %s218_s11, 1536  ;;  %p1231_p2 = scmp.lt.s32.totalorder %s218_s11, %s218_s11 }
  0x22   : > { %p1224_p1 = scmp.ne.s32.totalorder %s218_s11, %s1223_s17  ;;  %p1232_p6 = scmp.lt.s32.totalorder %s1223_s17, %s1223_s17 }
  0x24   : > { %p1226_p13 = pnand %p1224_p1, %p1188_p12  ;;  %p1233_p5 = por %p1232_p6, %p1231_p2 }
  0x26   : > { %p1227_p0 = pneg %p1226_p13 }
  0x28   : > { %p1234_p10 = pnand %p1233_p5, %p1227_p0 }
  0x2a   : > { %1237 = shalt.err (!%p1234_p10)
}
  0x2b   : > { %1105 = dma.hbm_to_vmem [thread:$0]  (!%p1435_p11), %s1646_s4, 1536, %s218_s11, [#allocation8], %s1338_s13, %s1338_s13, %s1339_s14  }
  0x2c   : > { %s1458_s20 = sadd.s32 1, %s1334_s26   ;;  %s31_s21 = sadd.s32 1, %s1330_s25 }
  0x2d   : > { %s28_s22 = ssub.s32 %s1334_s26, %s1458_s20  ;;  %p38_p1 = scmp.ne.s32.totalorder %s1330_s25, %s1326_s24 }
  0x2e   : > { %p29_p2 = scmp.eq.s32.totalorder %s28_s22, 0  ;;  %p39_p6 = scmp.eq.s32.totalorder %s1334_s26, 0 }
  0x2f   : > { %p1657_p12 = scmp.eq.s32.totalorder %s1407_s3, 1  ;;  %p1116_p7 = scmp.lt.s32.totalorder %s1334_s26, 2 }
  0x30   : > { %s1474_s7 = scalar_select %p29_p2, %s1330_s25, %s31_s21  }
  0x31   : > { %p1468_p3 = por %p1657_p12, %p38_p1  ;;  %p40_p9 = por %p39_p6, %p38_p1 }
  0x32   : > { %s234_s8 = sand.u32 1, %s1330_s25   ;;  %s983_s10 = sshll.u32 %s1334_s26, 8 }
  0x33   : > { %s1658_s27 = scalar_select %p1468_p3, 1, 0 }
  0x34   : > { %s938_s9 = sshll.u32 %s234_s8, 4  ;;  %s1481_s13 = scalar_lea.hbm %s1642_s0, %s983_s10 }
  0x35   : > { %s238_s14 = scalar_lea.vmem [#allocation4], %s938_s9  ;;  %p1485_p11 = pnand %p1116_p7, %p40_p9 }
  0x36   : > { %s245_s15 = sshll.u32 %s238_s14, 4  ;;  %s1489_s17 = scalar_lea.sflag [#allocation5], %s234_s8  ;;  %s1483_s15 = int_to_ptr.vmem [resolvable:$true] %s245_s15 }
  0x37   : > { %s1238_s18 = scalar_lea.hbm %s1481_s13, 256  ;;  %p1240_p0 = pneg %p1485_p11 }
  0x38   : > { %p1239_p13 = scmp.ne.s32.totalorder %s1481_s13, %s1238_s18  ;;  %s1243_s22 = scalar_lea.hbm %s1642_s0, 512 }
  0x39   : > { %p1244_p1 = scmp.lt.s32.totalorder %s1481_s13, %s1642_s0  ;;  %p1245_p2 = scmp.lt.s32.totalorder %s1243_s22, %s1238_s18 }
  0x3a   : > { %p1241_p5 = pnand %p1240_p0, %p1239_p13 }
  0x3b   : > { %p1246_p6 = por %p1245_p2, %p1244_p1 }
  0x3c   : > { %p1242_p10 = pneg %p1241_p5 }
  0x3e   : > { %p1247_p12 = pnand %p1246_p6, %p1242_p10 }
  0x40   : > { %1250 = shalt.err (!%p1247_p12)
}
  0x41   : > { %s1251_s8 = scalar_lea.vmem %s1483_s15, 256  ;;  %s1340_s11 = smov [#allocation4]  }
  0x42   : > { %p1252_p7 = scmp.ne.s32.totalorder %s1483_s15, %s1251_s8  ;;  %s1256_s12 = sshll.u32 %s1340_s11, 4  ;;  %s1257_s12 = int_to_ptr.vmem [resolvable:$false] %s1256_s12 }
  0x43   : > { %s1258_s14 = scalar_lea.vmem %s1257_s12, 512  ;;  %p1259_p5 = scmp.lt.s32.totalorder %s1483_s15, %s1257_s12 }
  0x44   : > { %p1254_p9 = pnand %p1252_p7, %p1240_p0  ;;  %p1260_p3 = scmp.lt.s32.totalorder %s1258_s14, %s1251_s8 }
  0x46   : > { %p1255_p13 = pneg %p1254_p9  ;;  %p1261_p4 = por %p1260_p3, %p1259_p5 }
  0x48   : > { %p1262_p8 = pnand %p1261_p4, %p1255_p13 }
  0x4a   : > { %1265 = shalt.err (!%p1262_p8)
}
  0x4b   : > { %s1341_s18 = smov 128   ;;  %s1342_s19 = smov 8  }
  0x4c   : > { %1109 = dma.hbm_to_vmem [thread:$0]  (!%p1485_p11), %s1481_s13, 256, %s1483_s15, %s1489_s17, %s1341_s18, %s1341_s18, %s1342_s19  }
  0x4d   : > { %p1660_p0 = scmp.ne.s32.totalorder %s1655_s30, 0 }
  0x4e   : > { %s1513_s21 = sand.u32 (!%p1660_p0), 1, %s1326_s24   ;;  %p1661_p4 = scmp.ne.s32.totalorder (!%p1660_p0), %s1653_s28, 0 }
  0x4f   : > { %257 = sbr.rel (%p1660_p0) target bundleno = 565 (0x235), region = 44  ;;  %s942_s22 = sshll.u32 (!%p1660_p0), %s1513_s21, 4 }
  0x50   : > { %s260_s9 = scalar_lea.sflag (!%p1660_p0), [#allocation5], %s1513_s21  ;;  %s263_s10 = scalar_lea.vmem (!%p1660_p0), [#allocation4], %s942_s22 }
  0x54   : > { %1309 = dma.done.wait (%p1661_p4), %s260_s9, 256  }
  0x55   : > { %1311 = vsyncadd (%p1661_p4), %s260_s9, 4294967040  ;;  %p1662_p8 = scmp.eq.s32.totalorder %s1407_s3, 0 }
  0x57   : > { %1313 = dma.done.wait (%p1662_p8), [#allocation8], 3072   ;;  %p1663_p3 = pmov %p1662_p8 }
  0x58   : > { %vm303_vm0 = vcmask 516096   ;;  %v1343_v0 = vmov 0.0   ;;  %vm1344_vm1 = vmmov 0   ;;  %v1162_v1 = vld [vmem:[#allocation7 + $0x18] sm:$0xff]   ;;  %v1164_v3 = vld [vmem:[#allocation7 + $0x10] sm:$0xff]   ;;  %v1166_v5 = vld [vmem:[#allocation7 + $0x8] sm:$0xff]  }
  0x59   : > { %1315 = vsyncadd (%p1663_p3), [#allocation8], 4294964224  ;;  %1015 = vmatprep.subr.bf16.mxu0 %v1343_v0  ;;  %1027 = vmatprep.subr.bf16.mxu1 %v1343_v0  ;;  %304 = vst.msk [vmem:[#allocation2] sm:$0x1] %vm303_vm0, %v1343_v0  ;;  %v1163_v2 = vld [vmem:[#allocation7 + $0x38] sm:$0xff]   ;;  %v1165_v4 = vld [vmem:[#allocation7 + $0x30] sm:$0xff]  }
  0x5a   : > { %305 = vst.msk [vmem:[#allocation2 + $0x11] sm:$0x1] %vm303_vm0, %v1343_v0  ;;  %1023 = vmatprep.mubr.msk.bf16.mxu0 %vm1344_vm1, %v1343_v0  ;;  %1035 = vmatprep.mubr.msk.bf16.mxu1 %vm1344_vm1, %v1343_v0  ;;  %vm306_vm2 = vcmask 523264   ;;  %v1167_v6 = vld [vmem:[#allocation7 + $0x28] sm:$0xff]   ;;  %v1539_v7 = vld [vmem:[%s263_s10] sm:$0xff]  ;;  %v1170_v11 = vld [vmem:[#allocation7 + $0x58] sm:$0xff]  }
  0x5b   : > { %1016 = vmatpush3.bf16.msra.mxu0 %v1162_v1  ;;  %1028 = vmatpush3.bf16.msra.mxu1 %v1163_v2  ;;  %v1541_v8 = vld [vmem:[%s263_s10 + $0x8] sm:$0xff]  ;;  %307 = vst.msk [vmem:[#allocation2 + $0x1] sm:$0xff] %vm306_vm2, %v1539_v7  ;;  %v1168_v9 = vld [vmem:[#allocation7] sm:$0xff]   ;;  %v1171_v18 = vld [vmem:[#allocation7 + $0x50] sm:$0xff]   ;;  %s561_s13 = sld [smem:[#allocation3]]  ;;  %s984_s17 = sshll.u32 %s1407_s3, 8 }
  0x5c   : > { %1017 = vmatprep.subr.bf16.mxu0 %v1343_v0  ;;  %1029 = vmatprep.subr.bf16.mxu1 %v1343_v0  ;;  %308 = vst.msk [vmem:[#allocation2 + $0x9] sm:$0xff] %vm306_vm2, %v1541_v8  ;;  %v1169_v10 = vld [vmem:[#allocation7 + $0x20] sm:$0xff]   ;;  %v1172_v19 = vld [vmem:[#allocation7 + $0x48] sm:$0xff]   ;;  %v1174_v24 = vld [vmem:[#allocation9 + $0x18] sm:$0xff]   ;;  %s299_s8 = scalar_lea.vmem [#allocation10], %s942_s22  ;;  %s1595_s18 = scalar_lea.hbm %s1648_s6, %s984_s17 }
  0x5d   : > { %v1173_v20 = vld [vmem:[#allocation7 + $0x40] sm:$0xff]   ;;  %v1175_v25 = vld [vmem:[#allocation9 + $0x38] sm:$0xff]   ;;  %v1176_v26 = vld [vmem:[#allocation9 + $0x10] sm:$0xff]   ;;  %s841_s11 = sshll.u32 %s299_s8, 4  ;;  %s828_s3 = scalar_lea.sflag [#allocation6], %s1513_s21  ;;  %s1597_s11 = int_to_ptr.vmem [resolvable:$true] %s841_s11 }
  0x5e   : > { %v1177_v27 = vld [vmem:[#allocation9 + $0x30] sm:$0xff]   ;;  %v1178_v28 = vld [vmem:[#allocation9 + $0x8] sm:$0xff]   ;;  %v1180_v30 = vld [vmem:[#allocation9] sm:$0xff]   ;;  %s1266_s19 = scalar_lea.vmem %s1597_s11, 256  ;;  %p1664_p10 = scmp.ne.s32.totalorder %s1658_s27, 0 }
  0x5f   : > { %1018 = vmatpush3.bf16.msra.mxu0 %v1164_v3  ;;  %1030 = vmatpush3.bf16.msra.mxu1 %v1165_v4  ;;  %v1179_v29 = vld [vmem:[#allocation9 + $0x28] sm:$0xff]   ;;  %v1181_v31 = vld [vmem:[#allocation9 + $0x20] sm:$0xff]   ;;  %v1182_v57 = vld [vmem:[#allocation9 + $0x58] sm:$0xff]   ;;  %p1267_p11 = scmp.ne.s32.totalorder %s1597_s11, %s1266_s19  ;;  %s1345_s22 = smov [#allocation10]  }
  0x60   : > { %1019 = vmatprep.subr.bf16.mxu0 %v1343_v0  ;;  %1031 = vmatprep.subr.bf16.mxu1 %v1343_v0  ;;  %v951_v40 = vld [vmem:[%s1644_s2] ss:$0 sm:$0xff]  ;;  %v1183_v63 = vld [vmem:[#allocation9 + $0x50] sm:$0xff]   ;;  %v1185_v2 = vld [vmem:[#allocation9 + $0x40] sm:$0xff]   ;;  %s1270_s9 = sshll.u32 %s1345_s22, 4  ;;  %s1271_s9 = int_to_ptr.vmem [resolvable:$false] %s1270_s9 }
  0x61   : > { %v564_v45 = vstv %s561_s13  ;;  %v1184_v1 = vld [vmem:[#allocation9 + $0x48] sm:$0xff]   ;;  %p1268_p1 = pnand %p1267_p11, %p1664_p10  ;;  %s1272_s10 = scalar_lea.vmem %s1271_s9, 512 }
  0x62   : > { %v318_v12 = vld [vmem:[#allocation2] sm:$0xff]  ;;  %p1273_p6 = scmp.lt.s32.totalorder %s1597_s11, %s1271_s9  ;;  %p1274_p12 = scmp.lt.s32.totalorder %s1272_s10, %s1266_s19 }
  0x63   : > { %1020 = vmatpush3.bf16.msra.mxu0 %v1166_v5  ;;  %1032 = vmatpush3.bf16.msra.mxu1 %v1167_v6  ;;  %v319_v13 = vld [vmem:[#allocation2 + $0x8] sm:$0xff]  ;;  %p1269_p2 = pneg %p1268_p1 }
  0x64   : > { %1021 = vmatprep.subr.bf16.mxu0 %v1343_v0  ;;  %1033 = vmatprep.subr.bf16.mxu1 %v1343_v0  ;;  %v406_v14 = vld [vmem:[#allocation2 + $0x1] sm:$0xff]  ;;  %v320_v15 = vpack.c.bf16 %v319_v13, %v318_v12  ;;  %v407_v16 = vld [vmem:[#allocation2 + $0x9] sm:$0xff]  ;;  %p1275_p7 = por %p1274_p12, %p1273_p6 }
  0x65   : > { %v408_v17 = vpack.c.bf16 %v407_v16, %v406_v14  ;;  %v488_v21 = vld [vmem:[#allocation2 + $0x2] sm:$0xff]  ;;  %v489_v22 = vld [vmem:[#allocation2 + $0xa] sm:$0xff] }
  0x66   : > { %v490_v23 = vpack.c.bf16 %v489_v22, %v488_v21  ;;  %p1276_p9 = pnand %p1275_p7, %p1269_p2 }
  0x67   : > { %1022 = vmatpush3.bf16.msra.mxu0 %v1168_v9  ;;  %1034 = vmatpush3.bf16.msra.mxu1 %v1169_v10 }
  0x68   : > { %1039 = vmatprep.subr.bf16.mxu0 %v1343_v0  ;;  %1051 = vmatprep.subr.bf16.mxu1 %v1343_v0 }
  0x6a   : > { %1024 = vmatmul.mubr.msk.bf16.vlgmr.msra.gmra.mxu0 %vm306_vm2, %v320_v15  ;;  %1036 = vmatmul.mubr.msk.bf16.vlgmr.msra.gmra.mxu1 %vm306_vm2, %v408_v17 }
  0x6b   : > { %1040 = vmatpush3.bf16.msra.mxu0 %v1170_v11  ;;  %1047 = vmatprep.mubr.msk.bf16.mxu0 %vm1344_vm1, %v1343_v0 }
  0x6c   : > { %1041 = vmatprep.subr.bf16.mxu0 %v1343_v0  ;;  %1059 = vmatprep.mubr.msk.bf16.mxu1 %vm1344_vm1, %v1343_v0 }
  0x6d   : > { %1052 = vmatpush3.bf16.msra.mxu1 %v1174_v24 }
  0x6e   : > { %1053 = vmatprep.subr.bf16.mxu1 %v1343_v0 }
  0x6f   : > { %1042 = vmatpush3.bf16.msra.mxu0 %v1171_v18 }
  0x70   : > { %1043 = vmatprep.subr.bf16.mxu0 %v1343_v0 }
  0x71   : > { %1054 = vmatpush3.bf16.msra.mxu1 %v1176_v26 }
  0x72   : > { %1055 = vmatprep.subr.bf16.mxu1 %v1343_v0 }
  0x73   : > { %1044 = vmatpush3.bf16.msra.mxu0 %v1172_v19 }
  0x74   : > { %1045 = vmatprep.subr.bf16.mxu0 %v1343_v0 }
  0x75   : > { %1056 = vmatpush3.bf16.msra.mxu1 %v1178_v28 }
  0x76   : > { %1057 = vmatprep.subr.bf16.mxu1 %v1343_v0 }
  0x77   : > { %1046 = vmatpush3.bf16.msra.mxu0 %v1173_v20 }
  0x78   : > { %1063 = vmatprep.subr.bf16.mxu0 %v1343_v0 }
  0x79   : > { %1058 = vmatpush3.bf16.msra.mxu1 %v1180_v30 }
  0x7a   : > { %1048 = vmatmul.mubr.msk.bf16.vlgmr.msra.gmra.mxu0 %vm306_vm2, %v490_v23  ;;  %1075 = vmatprep.subr.bf16.mxu1 %v1343_v0 }
  0x7b   : > { %1071 = vmatprep.mubr.msk.bf16.mxu0 %vm1344_vm1, %v1343_v0  ;;  %1064 = vmatpush3.bf16.msra.mxu0 %v1175_v25 }
  0x7c   : > { %1065 = vmatprep.subr.bf16.mxu0 %v1343_v0 }
  0x7f   : > { %1066 = vmatpush3.bf16.msra.mxu0 %v1177_v27 }
  0x80   : > { %1067 = vmatprep.subr.bf16.mxu0 %v1343_v0 }
  0x83   : > { %1068 = vmatpush3.bf16.msra.mxu0 %v1179_v29 }
  0x84   : > { %1069 = vmatprep.subr.bf16.mxu0 %v1343_v0 }
  0x87   : > { %1070 = vmatpush3.bf16.msra.mxu0 %v1181_v31 }
 0x12a   : > { %v382_v32 = vpop.f32.mrf.mxu0  ;;  %v470_v33 = vpop.f32.mrf.mxu1 }
 0x12b   : > { %v395_v41 = vadd.f32 %v951_v40, %v382_v32 }
 0x12c   : > { %v1025_v34 = vpop.f32.mrf.mxu0  ;;  %v1037_v35 = vpop.f32.mrf.mxu1 }
 0x12d   : > { %v477_v42 = vadd.f32 %v470_v33, %v395_v41 }
 0x12e   : > { %v385_v36 = vpop.f32.mrf.mxu0  ;;  %v473_v37 = vpop.f32.mrf.mxu1 }
 0x12f   : > { %v396_v43 = vadd.f32 %v951_v40, %v385_v36 }
 0x130   : > { %v1026_v38 = vpop.f32.mrf.mxu0  ;;  %v1038_v39 = vpop.f32.mrf.mxu1 }
 0x131   : > { %v478_v48 = vadd.f32 %v473_v37, %v396_v43 }
 0x13a   : > { %v552_v44 = vpop.f32.mrf.mxu0 }
 0x13b   : > { %v559_v46 = vadd.f32 %v552_v44, %v477_v42 }
 0x13c   : > { %v1049_v47 = vpop.f32.mrf.mxu0 }
 0x13d   : > { %vm562_vm3 = vcmp.ge.f32.partialorder %v559_v46, 0.0  ;;  %v565_v49 = vmul.f32 %v564_v45, %v559_v46 }
 0x13e   : > { %v555_v50 = vpop.f32.mrf.mxu0 }
 0x13f   : > { %v567_v51 = vsel %vm562_vm3, %v559_v46, %v565_v49  ;;  %v560_v52 = vadd.f32 %v555_v50, %v478_v48 }
 0x140   : > { %569 = vst.msk [vmem:[#allocation2 + $0x1] sm:$0xff] %vm306_vm2, %v567_v51  ;;  %v1050_v53 = vpop.f32.mrf.mxu0 }
 0x141   : > { %vm563_vm4 = vcmp.ge.f32.partialorder %v560_v52, 0.0  ;;  %v566_v54 = vmul.f32 %v564_v45, %v560_v52 }
 0x143   : > { %v568_v55 = vsel %vm563_vm4, %v560_v52, %v566_v54 }
 0x144   : > { %570 = vst.msk [vmem:[#allocation2 + $0x9] sm:$0xff] %vm306_vm2, %v568_v55 }
 0x147   : > { %v580_v56 = vld [vmem:[#allocation2] sm:$0xff] }
 0x148   : > { %v668_v59 = vld [vmem:[#allocation2 + $0x1] sm:$0xff] }
 0x14b   : > { %v581_v58 = vld [vmem:[#allocation2 + $0x8] sm:$0xff] }
 0x14c   : > { %v669_v60 = vld [vmem:[#allocation2 + $0x9] sm:$0xff]  ;;  %v582_v61 = vpack.c.bf16 %v581_v58, %v580_v56 }
 0x14d   : > { %v670_v62 = vpack.c.bf16 %v669_v60, %v668_v59  ;;  %v750_v3 = vld [vmem:[#allocation2 + $0x2] sm:$0xff]  ;;  %v751_v4 = vld [vmem:[#allocation2 + $0xa] sm:$0xff] }
 0x14e   : > { %1060 = vmatmul.mubr.msk.bf16.vlgmr.msra.gmra.mxu1 %vm306_vm2, %v582_v61  ;;  %v752_v5 = vpack.c.bf16 %v751_v4, %v750_v3 }
 0x14f   : > { %1072 = vmatmul.mubr.msk.bf16.vlgmr.msra.gmra.mxu0 %vm306_vm2, %v670_v62  ;;  %1076 = vmatpush3.bf16.msra.mxu1 %v1182_v57 }
 0x150   : > { %1083 = vmatprep.mubr.msk.bf16.mxu1 %vm1344_vm1, %v1343_v0  ;;  %1077 = vmatprep.subr.bf16.mxu1 %v1343_v0 }
 0x153   : > { %1078 = vmatpush3.bf16.msra.mxu1 %v1183_v63 }
 0x154   : > { %1079 = vmatprep.subr.bf16.mxu1 %v1343_v0 }
 0x157   : > { %1080 = vmatpush3.bf16.msra.mxu1 %v1184_v1 }
 0x158   : > { %1081 = vmatprep.subr.bf16.mxu1 %v1343_v0  ;;  %v967_v0 = vld [vmem:[%s1647_s5] ss:$0 sm:$0xff] }
 0x15b   : > { %1082 = vmatpush3.bf16.msra.mxu1 %v1185_v2 }
 0x15e   : > { %1084 = vmatmul.mubr.msk.bf16.vlgmr.msra.gmra.mxu1 %vm306_vm2, %v752_v5 }
 0x20e   : > { %v644_v6 = vpop.f32.mrf.mxu1 }
 0x20f   : > { %v732_v9 = vpop.f32.mrf.mxu0  ;;  %v657_v16 = vadd.f32 %v967_v0, %v644_v6 }
 0x210   : > { %v1061_v10 = vpop.f32.mrf.mxu1 }
 0x211   : > { %v1073_v11 = vpop.f32.mrf.mxu0  ;;  %v739_v17 = vadd.f32 %v732_v9, %v657_v16 }
 0x212   : > { %v647_v12 = vpop.f32.mrf.mxu1 }
 0x213   : > { %v735_v13 = vpop.f32.mrf.mxu0  ;;  %v658_v18 = vadd.f32 %v967_v0, %v647_v12 }
 0x214   : > { %v1062_v14 = vpop.f32.mrf.mxu1 }
 0x215   : > { %v1074_v15 = vpop.f32.mrf.mxu0  ;;  %v740_v22 = vadd.f32 %v735_v13, %v658_v18 }
 0x21e   : > { %v814_v19 = vpop.f32.mrf.mxu1 }
 0x21f   : > { %v821_v20 = vadd.f32 %v814_v19, %v739_v17 }
 0x220   : > { %v1085_v21 = vpop.f32.mrf.mxu1 }
 0x221   : > { %v823_v23 = vadd.f32 %v821_v20, %v1539_v7 }
 0x222   : > { %v817_v24 = vpop.f32.mrf.mxu1 }
 0x223   : > { %825 = vst.msk [vmem:[%s299_s8] sm:$0xff] %vm306_vm2, %v823_v23  ;;  %v822_v25 = vadd.f32 %v817_v24, %v740_v22 }
 0x224   : > { %v1086_v26 = vpop.f32.mrf.mxu1 }
 0x225   : > { %v824_v7 = vadd.f32 %v822_v25, %v1541_v8 }
 0x227   : > { %826 = vst.msk [vmem:[%s299_s8 + $0x8] sm:$0xff] %vm306_vm2, %v824_v7 }
 0x228   : > { %1279 = shalt.err (!%p1276_p9)
}
 0x229   : > { %s1280_s28 = scalar_lea.hbm %s1595_s18, 256  ;;  %s1284_s15 = scalar_lea.hbm %s1648_s6, 512 }
 0x22a   : > { %p1281_p13 = scmp.ne.s32.totalorder %s1595_s18, %s1280_s28  ;;  %p1285_p4 = scmp.lt.s32.totalorder %s1595_s18, %s1648_s6 }
 0x22b   : > { %p1286_p8 = scmp.lt.s32.totalorder %s1284_s15, %s1280_s28 }
 0x22c   : > { %p1282_p5 = pnand %p1281_p13, %p1664_p10 }
 0x22d   : > { %p1287_p3 = por %p1286_p8, %p1285_p4 }
 0x22e   : > { %p1283_p0 = pneg %p1282_p5 }
 0x230   : > { %p1288_p11 = pnand %p1287_p3, %p1283_p0 }
 0x232   : > { %1291 = shalt.err (!%p1288_p11)
}
 0x233   : > { %s1346_s8 = smov 128   ;;  %s1347_s12 = smov 8  }
 0x234   : > { %1097 = dma.vmem_to_hbm [thread:$0]  (%p1664_p10), %s1597_s11, 256, %s1595_s18, %s828_s3, %s1346_s8, %s1346_s8, %s1347_s12  }
 0x235 PF: > { %s856_s14 = sand.u32 1, %s1322_s23   ;;  %p1665_p1 = scmp.ne.s32.totalorder %s1654_s29, 0 }
 0x236   : > { %p1666_p2 = scmp.ge.s32.totalorder %s1334_s26, 2  ;;  %s857_s19 = scalar_lea.sflag [#allocation6], %s856_s14 }
 0x238   : > { %p1111_p6 = pnand %p1666_p2, %p1665_p1 }
 0x23a   : > { %p1112_p12 = pneg %p1111_p6 }
 0x23c   : > { %1317 = dma.done.wait (%p1112_p12), %s857_s19, 256  }
 0x23d   : > { %1319 = vsyncadd (%p1112_p12), %s857_s19, 4294967040  ;;  %p21_p7 = scmp.ge.s32.totalorder %s1458_s20, 4   ;;  %s1667_s23 = smov %s1326_s24 }
 0x23e   : > { %s1668_s24 = smov %s1330_s25  ;;  %s1669_s25 = smov %s1474_s7 }
 0x23f   : > { %s1670_s26 = smov %s1458_s20  ;;  %23 = sbr.rel (!%p21_p7) target bundleno = 8 (0x8), region = 101 }
 0x244   :  { %862 = vsyncpa [#allocation5], 1 }
 0x245   :  { %864 = vsyncpa [#allocation5 + $0x1], 1 }
 0x246   :  { %865 = vsyncpa [#allocation8], 1 }
 0x247   :  { %866 = vsyncpa [#allocation6], 1 }
 0x248   :  { %868 = vsyncpa [#allocation6 + $0x1], 1 }

</bundles_post_ra>
